<compile_context>
chip_gen: v5e
topology: v5e:2x2
jax: 0.10.0
libtpu: 0.0.40
codegen_flags: <defaults>
</compile_context>

<pallas_src>
import math

import jax
import jax.numpy as jnp
from jax.experimental import pallas as pl
from jax.experimental.pallas import tpu as pltpu


def _round_up(v, m):
    return (v + m - 1) // m * m


def _vmem_budget_bytes():
    """Generation-aware VMEM budget with headroom for compiler scratch."""
    cap = None
    try:
        cap = getattr(pltpu.get_tpu_info(), "vmem_capacity_bytes", None)
    except Exception:
        cap = None
    if not cap:
        cap = 64 * 2**20  # conservative default: v7x per-TensorCore VMEM
    return int(cap * 0.85)


def _fc_mlp_kernel(x_ref, w1_ref, b1_ref, w2_ref, b2_ref, o_ref):
    """Fused per-tile: hidden = relu(x @ W1 + b1); out = hidden @ W2 + b2."""
    # In-kernel cast of the activation tile to the MXU operand dtype (bf16);
    # this replaces the host-side pad/convert pass over x.
    x = x_ref[...].astype(w1_ref.dtype)
    # First matmul on the MXU, f32 accumulation.
    h = jnp.dot(x, w1_ref[...], preferred_element_type=jnp.float32)   # (TM, H_pad)
    # Bias add + ReLU stay f32 on the accumulator (v5e VPU has no bf16).
    h = jnp.maximum(h + b1_ref[...], 0.0)
    # Cast only the MXU operand of the second matmul (bf16 feed, f32 acc).
    o = jnp.dot(h.astype(w2_ref.dtype), w2_ref[...],
                preferred_element_type=jnp.float32)                   # (TM, C_pad)
    o_ref[...] = (o + b2_ref[...]).astype(o_ref.dtype)


def fc_model_forward(x_nchw, w1, b1, w2, b2, *, block_m=1024, use_bf16=True,
                     single_buffer_weights=True):
    """Forward pass of FC_model.

    x_nchw : (N, C, H, W) float32
    w1     : (F, hidden)   with F = C*H*W
    b1     : (hidden,)
    w2     : (hidden, num_classes)
    b2     : (num_classes,)
    returns: (N, num_classes) float32 logits
    """
    n = x_nchw.shape[0]
    f = math.prod(x_nchw.shape[1:])
    hidden = w1.shape[1]
    num_classes = w2.shape[1]
    assert w1.shape[0] == f, (w1.shape, f)

    # ---- lane-dense padded sizes (hidden / classes -> unmasked vst) ------
    h_pad = _round_up(hidden, 128)
    c_pad = _round_up(num_classes, 128)

    mxu_dtype = jnp.bfloat16 if use_bf16 else jnp.float32
    mxu_bytes = 2 if use_bf16 else 4
    x_bytes = x_nchw.dtype.itemsize

    SUBLANE = 16  # bf16 packs two rows/sublane -> minimum dense tile is (16,128)

    vmem_budget = _vmem_budget_bytes()

    def est_vmem(tm):
        # Weights/biases counted at 2x (double-buffer default) even when we
        # request single buffering -> conservative, never under-counts.
        return int(
            2 * tm * f * x_bytes            # x tiles (double-buffered DMA)
            + tm * f * mxu_bytes            # in-kernel bf16 copy of the x tile
            + tm * h_pad * (4 + mxu_bytes)  # f32 hidden + bf16 operand copy
            + 2 * tm * c_pad * 4            # out tiles (double-buffered)
            + 2 * (f * h_pad + h_pad * c_pad) * mxu_bytes  # W1, W2
            + 2 * (h_pad + c_pad) * 4)      # biases

    # ---- batch tile selection --------------------------------------------
    block_m = _round_up(max(block_m, SUBLANE), SUBLANE)
    while block_m > SUBLANE and est_vmem(block_m) > vmem_budget:
        block_m = _round_up(block_m // 2, SUBLANE)

    g = pl.cdiv(n, block_m)
    # Keep grid >= 2 once the batch is big enough to split usefully so both
    # v7x TensorCores get work (near-neutral on v5e/v6e at these sizes).
    if g == 1 and n >= 16 * SUBLANE:
        g = 2
    tm = _round_up(pl.cdiv(n, g), SUBLANE)   # balanced tiles; pad < 16 rows/tile
    n_pad = g * tm

    # ---- host-side glue kept minimal --------------------------------------
    # x: reshape is metadata-only; only the batch axis is padded (no dtype
    # conversion / feature padding pass over the activation).
    x2d = x_nchw.reshape(n, f)
    x_p = x2d if n_pad == n else jnp.pad(x2d, ((0, n_pad - n), (0, 0)))

    # Parameters (small, one-time): pad hidden/class axes + cast MXU operands.
    # Zero padding is numerically inert: padded hidden cols ReLU to 0, padded
    # W2 rows are 0, padded logit columns are sliced off below.
    w1_p = jnp.pad(w1, ((0, 0), (0, h_pad - hidden))).astype(mxu_dtype)
    b1_p = jnp.pad(b1.astype(jnp.float32), (0, h_pad - hidden)).reshape(1, h_pad)
    w2_p = jnp.pad(w2, ((0, h_pad - hidden), (0, c_pad - num_classes))).astype(mxu_dtype)
    b2_p = jnp.pad(b2.astype(jnp.float32), (0, c_pad - num_classes)).reshape(1, c_pad)

    est = est_vmem(tm)
    vmem_limit = int(max(min(2 * est, vmem_budget), 32 * 2**20))

    # Scheduling hint for XLA around the custom call.
    cost = pl.CostEstimate(
        flops=int(2 * n_pad * (f * h_pad + h_pad * c_pad)),
        transcendentals=0,
        bytes_accessed=int(n_pad * f * x_bytes
                           + (f * h_pad + h_pad * c_pad) * mxu_bytes
                           + (h_pad + c_pad) * 4
                           + n_pad * c_pad * 4))

    grid = (g,)
    x_spec = pl.BlockSpec((tm, f), lambda i: (i, 0))          # marches over batch
    out_spec = pl.BlockSpec((tm, c_pad), lambda i: (i, 0))

    def resident_spec(shape, single_buffer):
        index_map = lambda i: (0,) * len(shape)               # VMEM-resident
        if single_buffer:
            try:
                return pl.BlockSpec(shape, index_map, pipeline_mode=pl.Buffered(1))
            except TypeError:
                pass
        return pl.BlockSpec(shape, index_map)

    def run(single_buffer):
        in_specs = [
            x_spec,
            resident_spec((f, h_pad), single_buffer),          # W1
            resident_spec((1, h_pad), single_buffer),          # b1
            resident_spec((h_pad, c_pad), single_buffer),      # W2
            resident_spec((1, c_pad), single_buffer),          # b2
        ]
        return pl.pallas_call(
            _fc_mlp_kernel,
            out_shape=jax.ShapeDtypeStruct((n_pad, c_pad), jnp.float32),
            grid=grid,
            in_specs=in_specs,
            out_specs=out_spec,
            compiler_params=pltpu.CompilerParams(
                dimension_semantics=("parallel",),
                vmem_limit_bytes=vmem_limit,
            ),
            cost_estimate=cost,
        )(x_p, w1_p, b1_p, w2_p, b2_p)

    if single_buffer_weights:
        try:
            out_p = run(True)
        except Exception:
            # Fall back to default double-buffered resident weights if this
            # JAX/Mosaic build rejects single-buffered specs.
            out_p = run(False)
    else:
        out_p = run(False)

    return out_p[:n, :num_classes]


def init_params(key, input_features, hidden, num_classes):
    """Deterministic parameter init (Kaiming-uniform-ish, like nn.Linear)."""
    k1, k2, k3, k4 = jax.random.split(key, 4)
    lim1 = 1.0 / jnp.sqrt(jnp.float32(input_features))
    lim2 = 1.0 / jnp.sqrt(jnp.float32(hidden))
    w1 = jax.random.uniform(k1, (input_features, hidden), jnp.float32, -lim1, lim1)
    b1 = jax.random.uniform(k2, (hidden,), jnp.float32, -lim1, lim1)
    w2 = jax.random.uniform(k3, (hidden, num_classes), jnp.float32, -lim2, lim2)
    b2 = jax.random.uniform(k4, (num_classes,), jnp.float32, -lim2, lim2)
    return w1, b1, w2, b2


if __name__ == "__main__":
    # Small shapes consistent with the module: batch=2, 1x16x16 "digit" images,
    # hidden=32 (scaled-down from the default 1000), num_classes=10.
    N, C, H, W = 2, 1, 16, 16
    INPUT_FEATURES = C * H * W          # 256
    HIDDEN = 32
    NUM_CLASSES = 10

    key = jax.random.PRNGKey(0)
    kx, kp = jax.random.split(key)
    x = jax.random.normal(kx, (N, C, H, W), jnp.float32)
    w1, b1, w2, b2 = init_params(kp, INPUT_FEATURES, HIDDEN, NUM_CLASSES)

    logits = fc_model_forward(x, w1, b1, w2, b2)
    jax.block_until_ready(logits)
    assert logits.shape == (N, NUM_CLASSES)

    # Pure-JAX f32 reference; tolerance covers bf16 MXU-operand rounding.
    x2d = x.reshape(N, -1)
    ref = jnp.maximum(x2d @ w1 + b1, 0.0) @ w2 + b2
    assert jnp.allclose(logits, ref, atol=3e-2, rtol=3e-2), (
        float(jnp.max(jnp.abs(logits - ref))))

    print("KERNEL_OK")
</pallas_src>

<mosaic_0001>
module attributes {stable_mosaic.version = 11 : i64} {
  func.func @_fc_mlp_kernel(%arg0: i32, %arg1: memref<16x256xf32, #tpu.memory_space<vmem>>, %arg2: memref<256x128xbf16, #tpu.memory_space<vmem>>, %arg3: memref<1x128xf32, #tpu.memory_space<vmem>>, %arg4: memref<128x128xbf16, #tpu.memory_space<vmem>>, %arg5: memref<1x128xf32, #tpu.memory_space<vmem>>, %arg6: memref<16x128xf32, #tpu.memory_space<vmem>>) attributes {dimension_semantics = [#tpu.dimension_semantics<parallel>], iteration_bounds = array<i64: 1>, scalar_prefetch = 0 : i64, scratch_operands = 0 : i64, tpu.core_type = #tpu.core_type<tc>, window_params = [{transform_indices = @transform_0, window_bounds = array<i64: 16, 256>}, {pipeline_mode = #tpu.pipeline_mode<synchronous>, transform_indices = @transform_1, window_bounds = array<i64: 256, 128>}, {pipeline_mode = #tpu.pipeline_mode<synchronous>, transform_indices = @transform_2, window_bounds = array<i64: 1, 128>}, {pipeline_mode = #tpu.pipeline_mode<synchronous>, transform_indices = @transform_3, window_bounds = array<i64: 128, 128>}, {pipeline_mode = #tpu.pipeline_mode<synchronous>, transform_indices = @transform_4, window_bounds = array<i64: 1, 128>}, {transform_indices = @transform_5, window_bounds = array<i64: 16, 128>}]} {
    %c0 = arith.constant 0 : index
    %c0_0 = arith.constant 0 : index
    %0 = vector.load %arg1[%c0, %c0_0] : memref<16x256xf32, #tpu.memory_space<vmem>>, vector<16x256xf32>
    %1 = arith.truncf %0 : vector<16x256xf32> to vector<16x256xbf16>
    %c0_1 = arith.constant 0 : index
    %c0_2 = arith.constant 0 : index
    %2 = vector.load %arg2[%c0_1, %c0_2] : memref<256x128xbf16, #tpu.memory_space<vmem>>, vector<256x128xbf16>
    %cst = arith.constant dense<0.000000e+00> : vector<16x128xf32>
    %3 = tpu.matmul %1, %2, %cst {dimension_numbers = #tpu.dot_dimension_numbers<[1], [0], [0], [1], [0, 0, 1, 1], [], []>} : vector<16x256xbf16>, vector<256x128xbf16>, vector<16x128xf32> -> vector<16x128xf32>
    %c0_3 = arith.constant 0 : index
    %c0_4 = arith.constant 0 : index
    %4 = vector.load %arg3[%c0_3, %c0_4] : memref<1x128xf32, #tpu.memory_space<vmem>>, vector<1x128xf32>
    %5 = vector.broadcast %4 : vector<1x128xf32> to vector<16x128xf32>
    %6 = arith.addf %3, %5 : vector<16x128xf32>
    %cst_5 = arith.constant 0.000000e+00 : f32
    %7 = vector.broadcast %cst_5 : f32 to vector<16x128xf32>
    %8 = arith.maximumf %6, %7 : vector<16x128xf32>
    %9 = arith.truncf %8 : vector<16x128xf32> to vector<16x128xbf16>
    %c0_6 = arith.constant 0 : index
    %c0_7 = arith.constant 0 : index
    %10 = vector.load %arg4[%c0_6, %c0_7] : memref<128x128xbf16, #tpu.memory_space<vmem>>, vector<128x128xbf16>
    %cst_8 = arith.constant dense<0.000000e+00> : vector<16x128xf32>
    %11 = tpu.matmul %9, %10, %cst_8 {dimension_numbers = #tpu.dot_dimension_numbers<[1], [0], [0], [1], [0, 0, 1, 1], [], []>} : vector<16x128xbf16>, vector<128x128xbf16>, vector<16x128xf32> -> vector<16x128xf32>
    %c0_9 = arith.constant 0 : index
    %c0_10 = arith.constant 0 : index
    %12 = vector.load %arg5[%c0_9, %c0_10] : memref<1x128xf32, #tpu.memory_space<vmem>>, vector<1x128xf32>
    %13 = vector.broadcast %12 : vector<1x128xf32> to vector<16x128xf32>
    %14 = arith.addf %11, %13 : vector<16x128xf32>
    %c0_11 = arith.constant 0 : index
    %c0_12 = arith.constant 0 : index
    %15 = vector.load %arg6[%c0_11, %c0_12] : memref<16x128xf32, #tpu.memory_space<vmem>>, vector<16x128xf32>
    tpu.vector_store %arg6[%c0_11, %c0_12], %14 {strides = array<i32>} : memref<16x128xf32, #tpu.memory_space<vmem>>, vector<16x128xf32>,
    return
  }
  func.func @transform_0(%arg0: i32) -> (i32, i32) {
    %c0_i32 = arith.constant 0 : i32
    %c0_i32_0 = arith.constant 0 : i32
    return %arg0, %c0_i32 : i32, i32
  }
  func.func @transform_1(%arg0: i32) -> (i32, i32) {
    %c0_i32 = arith.constant 0 : i32
    %c0_i32_0 = arith.constant 0 : i32
    %c0_i32_1 = arith.constant 0 : i32
    return %c0_i32, %c0_i32_0 : i32, i32
  }
  func.func @transform_2(%arg0: i32) -> (i32, i32) {
    %c0_i32 = arith.constant 0 : i32
    %c0_i32_0 = arith.constant 0 : i32
    %c0_i32_1 = arith.constant 0 : i32
    return %c0_i32, %c0_i32_0 : i32, i32
  }
  func.func @transform_3(%arg0: i32) -> (i32, i32) {
    %c0_i32 = arith.constant 0 : i32
    %c0_i32_0 = arith.constant 0 : i32
    %c0_i32_1 = arith.constant 0 : i32
    return %c0_i32, %c0_i32_0 : i32, i32
  }
  func.func @transform_4(%arg0: i32) -> (i32, i32) {
    %c0_i32 = arith.constant 0 : i32
    %c0_i32_0 = arith.constant 0 : i32
    %c0_i32_1 = arith.constant 0 : i32
    return %c0_i32, %c0_i32_0 : i32, i32
  }
  func.func @transform_5(%arg0: i32) -> (i32, i32) {
    %c0_i32 = arith.constant 0 : i32
    %c0_i32_0 = arith.constant 0 : i32
    return %arg0, %c0_i32 : i32, i32
  }
}

module attributes {stable_mosaic.version = 11 : i64} {
  func.func @_fc_mlp_kernel(%arg0: i32, %arg1: memref<16x256xf32, #tpu.memory_space<vmem>>, %arg2: memref<256x128xbf16, #tpu.memory_space<vmem>>, %arg3: memref<1x128xf32, #tpu.memory_space<vmem>>, %arg4: memref<128x128xbf16, #tpu.memory_space<vmem>>, %arg5: memref<1x128xf32, #tpu.memory_space<vmem>>, %arg6: memref<16x128xf32, #tpu.memory_space<vmem>>) attributes {dimension_semantics = [#tpu.dimension_semantics<parallel>], iteration_bounds = array<i64: 1>, scalar_prefetch = 0 : i64, scratch_operands = 0 : i64, tpu.core_type = #tpu.core_type<tc>, window_params = [{transform_indices = @transform_0, window_bounds = array<i64: 16, 256>}, {pipeline_mode = #tpu.pipeline_mode<synchronous>, transform_indices = @transform_1, window_bounds = array<i64: 256, 128>}, {pipeline_mode = #tpu.pipeline_mode<synchronous>, transform_indices = @transform_2, window_bounds = array<i64: 1, 128>}, {pipeline_mode = #tpu.pipeline_mode<synchronous>, transform_indices = @transform_3, window_bounds = array<i64: 128, 128>}, {pipeline_mode = #tpu.pipeline_mode<synchronous>, transform_indices = @transform_4, window_bounds = array<i64: 1, 128>}, {transform_indices = @transform_5, window_bounds = array<i64: 16, 128>}]} {
    %c0 = arith.constant 0 : index
    %c0_0 = arith.constant 0 : index
    %0 = vector.load %arg1[%c0, %c0_0] : memref<16x256xf32, #tpu.memory_space<vmem>>, vector<16x256xf32>
    %1 = arith.truncf %0 : vector<16x256xf32> to vector<16x256xbf16>
    %c0_1 = arith.constant 0 : index
    %c0_2 = arith.constant 0 : index
    %2 = vector.load %arg2[%c0_1, %c0_2] : memref<256x128xbf16, #tpu.memory_space<vmem>>, vector<256x128xbf16>
    %cst = arith.constant dense<0.000000e+00> : vector<16x128xf32>
    %3 = tpu.matmul %1, %2, %cst {dimension_numbers = #tpu.dot_dimension_numbers<[1], [0], [0], [1], [0, 0, 1, 1], [], []>} : vector<16x256xbf16>, vector<256x128xbf16>, vector<16x128xf32> -> vector<16x128xf32>
    %c0_3 = arith.constant 0 : index
    %c0_4 = arith.constant 0 : index
    %4 = vector.load %arg3[%c0_3, %c0_4] : memref<1x128xf32, #tpu.memory_space<vmem>>, vector<1x128xf32>
    %5 = vector.broadcast %4 : vector<1x128xf32> to vector<16x128xf32>
    %6 = arith.addf %3, %5 : vector<16x128xf32>
    %cst_5 = arith.constant 0.000000e+00 : f32
    %7 = vector.broadcast %cst_5 : f32 to vector<16x128xf32>
    %8 = arith.maximumf %6, %7 : vector<16x128xf32>
    %9 = arith.truncf %8 : vector<16x128xf32> to vector<16x128xbf16>
    %c0_6 = arith.constant 0 : index
    %c0_7 = arith.constant 0 : index
    %10 = vector.load %arg4[%c0_6, %c0_7] : memref<128x128xbf16, #tpu.memory_space<vmem>>, vector<128x128xbf16>
    %cst_8 = arith.constant dense<0.000000e+00> : vector<16x128xf32>
    %11 = tpu.matmul %9, %10, %cst_8 {dimension_numbers = #tpu.dot_dimension_numbers<[1], [0], [0], [1], [0, 0, 1, 1], [], []>} : vector<16x128xbf16>, vector<128x128xbf16>, vector<16x128xf32> -> vector<16x128xf32>
    %c0_9 = arith.constant 0 : index
    %c0_10 = arith.constant 0 : index
    %12 = vector.load %arg5[%c0_9, %c0_10] : memref<1x128xf32, #tpu.memory_space<vmem>>, vector<1x128xf32>
    %13 = vector.broadcast %12 : vector<1x128xf32> to vector<16x128xf32>
    %14 = arith.addf %11, %13 : vector<16x128xf32>
    %c0_11 = arith.constant 0 : index
    %c0_12 = arith.constant 0 : index
    %15 = vector.load %arg6[%c0_11, %c0_12] : memref<16x128xf32, #tpu.memory_space<vmem>>, vector<16x128xf32>
    tpu.vector_store %arg6[%c0_11, %c0_12], %14 {strides = array<i32>} : memref<16x128xf32, #tpu.memory_space<vmem>>, vector<16x128xf32>,
    return
  }
  func.func @transform_0(%arg0: i32) -> (i32, i32) {
    %c0_i32 = arith.constant 0 : i32
    %c0_i32_0 = arith.constant 0 : i32
    return %arg0, %c0_i32 : i32, i32
  }
  func.func @transform_1(%arg0: i32) -> (i32, i32) {
    %c0_i32 = arith.constant 0 : i32
    %c0_i32_0 = arith.constant 0 : i32
    %c0_i32_1 = arith.constant 0 : i32
    return %c0_i32, %c0_i32_0 : i32, i32
  }
  func.func @transform_2(%arg0: i32) -> (i32, i32) {
    %c0_i32 = arith.constant 0 : i32
    %c0_i32_0 = arith.constant 0 : i32
    %c0_i32_1 = arith.constant 0 : i32
    return %c0_i32, %c0_i32_0 : i32, i32
  }
  func.func @transform_3(%arg0: i32) -> (i32, i32) {
    %c0_i32 = arith.constant 0 : i32
    %c0_i32_0 = arith.constant 0 : i32
    %c0_i32_1 = arith.constant 0 : i32
    return %c0_i32, %c0_i32_0 : i32, i32
  }
  func.func @transform_4(%arg0: i32) -> (i32, i32) {
    %c0_i32 = arith.constant 0 : i32
    %c0_i32_0 = arith.constant 0 : i32
    %c0_i32_1 = arith.constant 0 : i32
    return %c0_i32, %c0_i32_0 : i32, i32
  }
  func.func @transform_5(%arg0: i32) -> (i32, i32) {
    %c0_i32 = arith.constant 0 : i32
    %c0_i32_0 = arith.constant 0 : i32
    return %arg0, %c0_i32 : i32, i32
  }
}

</mosaic_0001>

<bundles_post_ra>
// kernel: tpu_custom_call.1
= control target key start
LH: loop header
LB: loop body
LE: loop exit
PB: predicated region body
PF: predicated region fallthrough
CT: control target
= control target key end

     0   :  { %10 = vsyncpa [#allocation3], 0  ;;  %s633_s0 = inlined_call_operand.hbm [shape: f32[16,256], index: 0, kind: input, shape index: {}]   ;;  %s634_s1 = inlined_call_operand.hbm [shape: bf16[256,128], index: 1, kind: input, shape index: {}]   ;;  %s635_s2 = inlined_call_operand.vmem [shape: f32[1,128], index: 2, kind: input, shape index: {}]   ;;  %s636_s3 = inlined_call_operand.hbm [shape: bf16[128,128], index: 3, kind: input, shape index: {}]   ;;  %s637_s4 = inlined_call_operand.vmem [shape: f32[1,128], index: 4, kind: input, shape index: {}]   ;;  %s638_s5 = inlined_call_operand.hbm [shape: f32[16,128], index: 5, kind: output, shape index: {}]  }
   0x1   :  { %11 = vsyncpa [#allocation6], 0  ;;  %s30_s20 = sshll.u32 %s634_s1, 4  ;;  %s31_s20 = int_to_ptr.hbm [resolvable:$true] %s30_s20 }
   0x2   :  { %12 = vsyncpa [#allocation4], 0  ;;  %s575_s21 = smov [#allocation5]   ;;  %s17_s25 = sshll.u32 %s633_s0, 4  ;;  %s18_s25 = int_to_ptr.hbm [resolvable:$true] %s17_s25 }
   0x3   :  { %s32_s22 = sshll.u32 %s575_s21, 4  ;;  %s576_s26 = smov 64   ;;  %s33_s22 = int_to_ptr.vmem [resolvable:$true] %s32_s22 }
   0x4   :  { %s577_s27 = smov 4   ;;  %s578_s28 = smov [#allocation2]  }
   0x5   :  { %38 = dma.hbm_to_vmem [thread:$0]  %s31_s20, 2048, %s33_s22, [#allocation6], %s576_s26, %s576_s26, %s577_s27  }
   0x6   :  { %s19_s29 = sshll.u32 %s578_s28, 4  ;;  %s579_s30 = smov 256   ;;  %s20_s29 = int_to_ptr.vmem [resolvable:$true] %s19_s29 }
   0x7   :  { %s580_s6 = smov 16   ;;  %s45_s8 = sshll.u32 %s636_s3, 4  ;;  %s46_s8 = int_to_ptr.hbm [resolvable:$true] %s45_s8 }
   0x8   :  { %25 = dma.hbm_to_vmem [thread:$0]  %s18_s25, 512, %s20_s29, [#allocation3], %s579_s30, %s579_s30, %s580_s6  }
   0x9   :  { %s581_s9 = smov [#allocation7]  }
   0xa   :  { %s47_s10 = sshll.u32 %s581_s9, 4  ;;  %s48_s10 = int_to_ptr.vmem [resolvable:$true] %s47_s10 }
   0xb   :  { %53 = dma.hbm_to_vmem [thread:$0]  %s46_s8, 1024, %s48_s10, [#allocation6], %s576_s26, %s576_s26, %s577_s27  }
   0xc   :  { %569 = dma.done.wait [#allocation3], 512  }
   0xd   :  { %570 = vsyncadd [#allocation3], 4294966784 }
   0xe   :  { %571 = dma.done.wait [#allocation6], 3072  }
   0xf   :  { %572 = vsyncadd [#allocation6], 4294964224  ;;  %v444_v0 = vld [vmem:[#allocation5 + $0x38] sm:$0xff]  ;;  %v443_v2 = vld [vmem:[#allocation5 + $0x30] sm:$0xff]  ;;  %s582_s13 = smov [#allocation8]   ;;  %s327_s16 = sshll.u32 %s638_s5, 4  ;;  %s328_s16 = int_to_ptr.hbm [resolvable:$true] %s327_s16 }
  0x10   :  { %v452_v1 = vld [vmem:[#allocation5 + $0x78] sm:$0xff]  ;;  %206 = vmatpush.bf16.msra.mxu0 %v444_v0  ;;  %v451_v3 = vld [vmem:[#allocation5 + $0x70] sm:$0xff]  ;;  %v442_v4 = vld [vmem:[#allocation5 + $0x28] sm:$0xff]  ;;  %s325_s14 = sshll.u32 %s582_s13, 4  ;;  %s583_s17 = smov 128   ;;  %s326_s14 = int_to_ptr.vmem [resolvable:$true] %s325_s14 }
  0x11   :  { %220 = vmatpush.bf16.msra.mxu1 %v452_v1  ;;  %v450_v5 = vld [vmem:[#allocation5 + $0x68] sm:$0xff]  ;;  %v460_v6 = vld [vmem:[#allocation7 + $0x38] sm:$0xff]  ;;  %v459_v7 = vld [vmem:[#allocation7 + $0x30] sm:$0xff]  ;;  %s584_s18 = smov 8  }
  0x12   :  { %305 = vmatpush.bf16.msra.mxu2 %v460_v6  ;;  %v441_v8 = vld [vmem:[#allocation5 + $0x20] sm:$0xff]  ;;  %v458_v10 = vld [vmem:[#allocation7 + $0x28] sm:$0xff]  ;;  %v440_v11 = vld [vmem:[#allocation5 + $0x18] sm:$0xff] }
  0x13   :  { %v449_v9 = vld [vmem:[#allocation5 + $0x60] sm:$0xff]  ;;  %v448_v12 = vld [vmem:[#allocation5 + $0x58] sm:$0xff]  ;;  %v439_v14 = vld [vmem:[#allocation5 + $0x10] sm:$0xff] }
  0x14   :  { %207 = vmatpush.bf16.msra.mxu0 %v443_v2  ;;  %v457_v13 = vld [vmem:[#allocation7 + $0x20] sm:$0xff]  ;;  %v447_v15 = vld [vmem:[#allocation5 + $0x50] sm:$0xff]  ;;  %v438_v16 = vld [vmem:[#allocation5 + $0x8] sm:$0xff] }
  0x15   :  { %221 = vmatpush.bf16.msra.mxu1 %v451_v3  ;;  %v446_v17 = vld [vmem:[#allocation5 + $0x48] sm:$0xff]  ;;  %v437_v18 = vld [vmem:[#allocation5] sm:$0xff]  ;;  %v70_v21 = vld [vmem:[#allocation2 + $0x10] sm:$0xff] }
  0x16   :  { %306 = vmatpush.bf16.msra.mxu2 %v459_v7  ;;  %v445_v19 = vld [vmem:[#allocation5 + $0x40] sm:$0xff]  ;;  %v69_v22 = vld [vmem:[#allocation2 + $0x8] sm:$0xff]  ;;  %v71_v23 = vld [vmem:[#allocation2 + $0x18] sm:$0xff] }
  0x17   :  { %v68_v20 = vld [vmem:[#allocation2] sm:$0xff]  ;;  %v73_v25 = vpack.c.bf16 %v71_v23, %v69_v22  ;;  %v456_v26 = vld [vmem:[#allocation7 + $0x18] sm:$0xff]  ;;  %v455_v27 = vld [vmem:[#allocation7 + $0x10] sm:$0xff] }
  0x18   :  { %208 = vmatpush.bf16.msra.mxu0 %v442_v4  ;;  %v72_v24 = vpack.c.bf16 %v70_v21, %v68_v20  ;;  %v454_v28 = vld [vmem:[#allocation7 + $0x8] sm:$0xff]  ;;  %v453_v29 = vld [vmem:[#allocation7] sm:$0xff] }
  0x19   :  { %222 = vmatpush.bf16.msra.mxu1 %v450_v5  ;;  %v471_v32 = vld [vmem:[%s635_s2] ss:$0 sm:$0xff] }
  0x1a   :  { %307 = vmatpush.bf16.msra.mxu2 %v458_v10  ;;  %v472_v42 = vld [vmem:[%s637_s4] ss:$0 sm:$0xff] }
  0x1c   :  { %209 = vmatpush.bf16.msra.mxu0 %v441_v8 }
  0x1d   :  { %223 = vmatpush.bf16.msra.mxu1 %v449_v9 }
  0x1e   :  { %308 = vmatpush.bf16.msra.mxu2 %v457_v13 }
  0x20   :  { %210 = vmatpush.bf16.msra.mxu0 %v440_v11 }
  0x21   :  { %224 = vmatpush.bf16.msra.mxu1 %v448_v12 }
  0x22   :  { %309 = vmatpush.bf16.msra.mxu2 %v456_v26 }
  0x24   :  { %211 = vmatpush.bf16.msra.mxu0 %v439_v14 }
  0x25   :  { %225 = vmatpush.bf16.msra.mxu1 %v447_v15 }
  0x26   :  { %310 = vmatpush.bf16.msra.mxu2 %v455_v27 }
  0x28   :  { %212 = vmatpush.bf16.msra.mxu0 %v438_v16 }
  0x29   :  { %226 = vmatpush.bf16.msra.mxu1 %v446_v17 }
  0x2a   :  { %311 = vmatpush.bf16.msra.mxu2 %v454_v28 }
  0x2c   :  { %213 = vmatpush.bf16.msra.mxu0 %v437_v18 }
  0x2d   :  { %227 = vmatpush.bf16.msra.mxu1 %v445_v19 }
  0x2e   :  { %312 = vmatpush.bf16.msra.mxu2 %v453_v29 }
  0x2f   :  { %214 = vmatmul.bf16.vlgmr.msra.gmra.mxu0 %v72_v24 }
  0x30   :  { %228 = vmatmul.bf16.vlgmr.msra.gmra.mxu1 %v73_v25 }
  0xac   :  { %v215_v30 = vpop.f32.mrf.mxu0 }
  0xad   :  { %v229_v31 = vpop.f32.mrf.mxu1  ;;  %v216_v33 = vadd.f32 %v471_v32, %v215_v30 }
  0xaf   :  { %v230_v35 = vadd.f32 %v229_v31, %v216_v33 }
  0xb1   :  { %v234_v39 = vmax.f32 %v230_v35, 0.0 }
  0xb4   :  { %v217_v34 = vpop.f32.mrf.mxu0 }
  0xb5   :  { %v218_v36 = vadd.f32 %v471_v32, %v217_v34  ;;  %v231_v37 = vpop.f32.mrf.mxu1 }
  0xb7   :  { %v232_v38 = vadd.f32 %v231_v37, %v218_v36 }
  0xb9   :  { %v235_v40 = vmax.f32 %v232_v38, 0.0 }
  0xbb   :  { %v236_v41 = vpack.c.bf16 %v235_v40, %v234_v39 }
  0xbd   :  { %313 = vmatmul.bf16.vlgmr.msra.gmra.mxu2 %v236_v41 }
 0x140   :  { %v314_v43 = vpop.f32.mrf.mxu2 }
 0x141   :  { %v315_v44 = vadd.f32 %v472_v42, %v314_v43 }
 0x143   :  { %319 = vst [vmem:[#allocation8] sm:$0xff] %v315_v44 }
 0x148   :  { %v316_v45 = vpop.f32.mrf.mxu2 }
 0x149   :  { %v317_v46 = vadd.f32 %v472_v42, %v316_v45 }
 0x14b   :  { %320 = vst [vmem:[#allocation8 + $0x8] sm:$0xff] %v317_v46 }
 0x14c   :  { %333 = dma.vmem_to_hbm [thread:$0]  %s326_s14, 256, %s328_s16, [#allocation4], %s583_s17, %s583_s17, %s584_s18  }
 0x14d   :  { %573 = dma.done.wait [#allocation4], 256  }
 0x14e   :  { %574 = vsyncadd [#allocation4], 4294967040 }
 0x14f   :  { %338 = vsyncpa [#allocation3], 1 }
 0x150   :  { %339 = vsyncpa [#allocation6], 1 }
 0x151   :  { %340 = vsyncpa [#allocation4], 1 }

// kernel: tpu_custom_call.1
= control target key start
LH: loop header
LB: loop body
LE: loop exit
PB: predicated region body
PF: predicated region fallthrough
CT: control target
= control target key end

     0   :  { %10 = vsyncpa [#allocation3], 0  ;;  %s633_s0 = inlined_call_operand.hbm [shape: f32[16,256], index: 0, kind: input, shape index: {}]   ;;  %s634_s1 = inlined_call_operand.hbm [shape: bf16[256,128], index: 1, kind: input, shape index: {}]   ;;  %s635_s2 = inlined_call_operand.vmem [shape: f32[1,128], index: 2, kind: input, shape index: {}]   ;;  %s636_s3 = inlined_call_operand.hbm [shape: bf16[128,128], index: 3, kind: input, shape index: {}]   ;;  %s637_s4 = inlined_call_operand.vmem [shape: f32[1,128], index: 4, kind: input, shape index: {}]   ;;  %s638_s5 = inlined_call_operand.hbm [shape: f32[16,128], index: 5, kind: output, shape index: {}]  }
   0x1   :  { %11 = vsyncpa [#allocation6], 0  ;;  %s30_s20 = sshll.u32 %s634_s1, 4  ;;  %s31_s20 = int_to_ptr.hbm [resolvable:$true] %s30_s20 }
   0x2   :  { %12 = vsyncpa [#allocation4], 0  ;;  %s575_s21 = smov [#allocation5]   ;;  %s17_s25 = sshll.u32 %s633_s0, 4  ;;  %s18_s25 = int_to_ptr.hbm [resolvable:$true] %s17_s25 }
   0x3   :  { %s32_s22 = sshll.u32 %s575_s21, 4  ;;  %s576_s26 = smov 64   ;;  %s33_s22 = int_to_ptr.vmem [resolvable:$true] %s32_s22 }
   0x4   :  { %s577_s27 = smov 4   ;;  %s578_s28 = smov [#allocation2]  }
   0x5   :  { %38 = dma.hbm_to_vmem [thread:$0]  %s31_s20, 2048, %s33_s22, [#allocation6], %s576_s26, %s576_s26, %s577_s27  }
   0x6   :  { %s19_s29 = sshll.u32 %s578_s28, 4  ;;  %s579_s30 = smov 256   ;;  %s20_s29 = int_to_ptr.vmem [resolvable:$true] %s19_s29 }
   0x7   :  { %s580_s6 = smov 16   ;;  %s45_s8 = sshll.u32 %s636_s3, 4  ;;  %s46_s8 = int_to_ptr.hbm [resolvable:$true] %s45_s8 }
   0x8   :  { %25 = dma.hbm_to_vmem [thread:$0]  %s18_s25, 512, %s20_s29, [#allocation3], %s579_s30, %s579_s30, %s580_s6  }
   0x9   :  { %s581_s9 = smov [#allocation7]  }
   0xa   :  { %s47_s10 = sshll.u32 %s581_s9, 4  ;;  %s48_s10 = int_to_ptr.vmem [resolvable:$true] %s47_s10 }
   0xb   :  { %53 = dma.hbm_to_vmem [thread:$0]  %s46_s8, 1024, %s48_s10, [#allocation6], %s576_s26, %s576_s26, %s577_s27  }
   0xc   :  { %569 = dma.done.wait [#allocation3], 512  }
   0xd   :  { %570 = vsyncadd [#allocation3], 4294966784 }
   0xe   :  { %571 = dma.done.wait [#allocation6], 3072  }
   0xf   :  { %572 = vsyncadd [#allocation6], 4294964224  ;;  %v444_v0 = vld [vmem:[#allocation5 + $0x38] sm:$0xff]  ;;  %v443_v2 = vld [vmem:[#allocation5 + $0x30] sm:$0xff]  ;;  %s582_s13 = smov [#allocation8]   ;;  %s327_s16 = sshll.u32 %s638_s5, 4  ;;  %s328_s16 = int_to_ptr.hbm [resolvable:$true] %s327_s16 }
  0x10   :  { %v452_v1 = vld [vmem:[#allocation5 + $0x78] sm:$0xff]  ;;  %206 = vmatpush.bf16.msra.mxu0 %v444_v0  ;;  %v451_v3 = vld [vmem:[#allocation5 + $0x70] sm:$0xff]  ;;  %v442_v4 = vld [vmem:[#allocation5 + $0x28] sm:$0xff]  ;;  %s325_s14 = sshll.u32 %s582_s13, 4  ;;  %s583_s17 = smov 128   ;;  %s326_s14 = int_to_ptr.vmem [resolvable:$true] %s325_s14 }
  0x11   :  { %220 = vmatpush.bf16.msra.mxu1 %v452_v1  ;;  %v450_v5 = vld [vmem:[#allocation5 + $0x68] sm:$0xff]  ;;  %v460_v6 = vld [vmem:[#allocation7 + $0x38] sm:$0xff]  ;;  %v459_v7 = vld [vmem:[#allocation7 + $0x30] sm:$0xff]  ;;  %s584_s18 = smov 8  }
  0x12   :  { %305 = vmatpush.bf16.msra.mxu2 %v460_v6  ;;  %v441_v8 = vld [vmem:[#allocation5 + $0x20] sm:$0xff]  ;;  %v458_v10 = vld [vmem:[#allocation7 + $0x28] sm:$0xff]  ;;  %v440_v11 = vld [vmem:[#allocation5 + $0x18] sm:$0xff] }
  0x13   :  { %v449_v9 = vld [vmem:[#allocation5 + $0x60] sm:$0xff]  ;;  %v448_v12 = vld [vmem:[#allocation5 + $0x58] sm:$0xff]  ;;  %v439_v14 = vld [vmem:[#allocation5 + $0x10] sm:$0xff] }
  0x14   :  { %207 = vmatpush.bf16.msra.mxu0 %v443_v2  ;;  %v457_v13 = vld [vmem:[#allocation7 + $0x20] sm:$0xff]  ;;  %v447_v15 = vld [vmem:[#allocation5 + $0x50] sm:$0xff]  ;;  %v438_v16 = vld [vmem:[#allocation5 + $0x8] sm:$0xff] }
  0x15   :  { %221 = vmatpush.bf16.msra.mxu1 %v451_v3  ;;  %v446_v17 = vld [vmem:[#allocation5 + $0x48] sm:$0xff]  ;;  %v437_v18 = vld [vmem:[#allocation5] sm:$0xff]  ;;  %v70_v21 = vld [vmem:[#allocation2 + $0x10] sm:$0xff] }
  0x16   :  { %306 = vmatpush.bf16.msra.mxu2 %v459_v7  ;;  %v445_v19 = vld [vmem:[#allocation5 + $0x40] sm:$0xff]  ;;  %v69_v22 = vld [vmem:[#allocation2 + $0x8] sm:$0xff]  ;;  %v71_v23 = vld [vmem:[#allocation2 + $0x18] sm:$0xff] }
  0x17   :  { %v68_v20 = vld [vmem:[#allocation2] sm:$0xff]  ;;  %v73_v25 = vpack.c.bf16 %v71_v23, %v69_v22  ;;  %v456_v26 = vld [vmem:[#allocation7 + $0x18] sm:$0xff]  ;;  %v455_v27 = vld [vmem:[#allocation7 + $0x10] sm:$0xff] }
  0x18   :  { %208 = vmatpush.bf16.msra.mxu0 %v442_v4  ;;  %v72_v24 = vpack.c.bf16 %v70_v21, %v68_v20  ;;  %v454_v28 = vld [vmem:[#allocation7 + $0x8] sm:$0xff]  ;;  %v453_v29 = vld [vmem:[#allocation7] sm:$0xff] }
  0x19   :  { %222 = vmatpush.bf16.msra.mxu1 %v450_v5  ;;  %v471_v32 = vld [vmem:[%s635_s2] ss:$0 sm:$0xff] }
  0x1a   :  { %307 = vmatpush.bf16.msra.mxu2 %v458_v10  ;;  %v472_v42 = vld [vmem:[%s637_s4] ss:$0 sm:$0xff] }
  0x1c   :  { %209 = vmatpush.bf16.msra.mxu0 %v441_v8 }
  0x1d   :  { %223 = vmatpush.bf16.msra.mxu1 %v449_v9 }
  0x1e   :  { %308 = vmatpush.bf16.msra.mxu2 %v457_v13 }
  0x20   :  { %210 = vmatpush.bf16.msra.mxu0 %v440_v11 }
  0x21   :  { %224 = vmatpush.bf16.msra.mxu1 %v448_v12 }
  0x22   :  { %309 = vmatpush.bf16.msra.mxu2 %v456_v26 }
  0x24   :  { %211 = vmatpush.bf16.msra.mxu0 %v439_v14 }
  0x25   :  { %225 = vmatpush.bf16.msra.mxu1 %v447_v15 }
  0x26   :  { %310 = vmatpush.bf16.msra.mxu2 %v455_v27 }
  0x28   :  { %212 = vmatpush.bf16.msra.mxu0 %v438_v16 }
  0x29   :  { %226 = vmatpush.bf16.msra.mxu1 %v446_v17 }
  0x2a   :  { %311 = vmatpush.bf16.msra.mxu2 %v454_v28 }
  0x2c   :  { %213 = vmatpush.bf16.msra.mxu0 %v437_v18 }
  0x2d   :  { %227 = vmatpush.bf16.msra.mxu1 %v445_v19 }
  0x2e   :  { %312 = vmatpush.bf16.msra.mxu2 %v453_v29 }
  0x2f   :  { %214 = vmatmul.bf16.vlgmr.msra.gmra.mxu0 %v72_v24 }
  0x30   :  { %228 = vmatmul.bf16.vlgmr.msra.gmra.mxu1 %v73_v25 }
  0xac   :  { %v215_v30 = vpop.f32.mrf.mxu0 }
  0xad   :  { %v229_v31 = vpop.f32.mrf.mxu1  ;;  %v216_v33 = vadd.f32 %v471_v32, %v215_v30 }
  0xaf   :  { %v230_v35 = vadd.f32 %v229_v31, %v216_v33 }
  0xb1   :  { %v234_v39 = vmax.f32 %v230_v35, 0.0 }
  0xb4   :  { %v217_v34 = vpop.f32.mrf.mxu0 }
  0xb5   :  { %v218_v36 = vadd.f32 %v471_v32, %v217_v34  ;;  %v231_v37 = vpop.f32.mrf.mxu1 }
  0xb7   :  { %v232_v38 = vadd.f32 %v231_v37, %v218_v36 }
  0xb9   :  { %v235_v40 = vmax.f32 %v232_v38, 0.0 }
  0xbb   :  { %v236_v41 = vpack.c.bf16 %v235_v40, %v234_v39 }
  0xbd   :  { %313 = vmatmul.bf16.vlgmr.msra.gmra.mxu2 %v236_v41 }
 0x140   :  { %v314_v43 = vpop.f32.mrf.mxu2 }
 0x141   :  { %v315_v44 = vadd.f32 %v472_v42, %v314_v43 }
 0x143   :  { %319 = vst [vmem:[#allocation8] sm:$0xff] %v315_v44 }
 0x148   :  { %v316_v45 = vpop.f32.mrf.mxu2 }
 0x149   :  { %v317_v46 = vadd.f32 %v472_v42, %v316_v45 }
 0x14b   :  { %320 = vst [vmem:[#allocation8 + $0x8] sm:$0xff] %v317_v46 }
 0x14c   :  { %333 = dma.vmem_to_hbm [thread:$0]  %s326_s14, 256, %s328_s16, [#allocation4], %s583_s17, %s583_s17, %s584_s18  }
 0x14d   :  { %573 = dma.done.wait [#allocation4], 256  }
 0x14e   :  { %574 = vsyncadd [#allocation4], 4294967040 }
 0x14f   :  { %338 = vsyncpa [#allocation3], 1 }
 0x150   :  { %339 = vsyncpa [#allocation6], 1 }
 0x151   :  { %340 = vsyncpa [#allocation4], 1 }

</bundles_post_ra>
